<compile_context>
chip_gen: v7x
topology: tpu7x:2x2x1
jax: 0.10.0
libtpu: 0.0.40
codegen_flags: <defaults>
</compile_context>

<pallas_src>
import jax
import jax.numpy as jnp
from jax.experimental import pallas as pl
from jax.experimental.pallas import tpu as pltpu


def _round_up(x, m):
    return ((x + m - 1) // m) * m


def _cdiv(a, b):
    return (a + b - 1) // b


def _choose_tile(B, block_b):
    """Pick the batch-tile size (rows per grid step)."""
    if B <= 256:
        # Tiny batch: one padded tile (splitting it would only add per-step overhead).
        return _round_up(B, 8)
    # Moderate/large batch: choose an even step count (both v7x TCs get equal work)
    # that divides B as evenly as possible, tiles rounded up to 128 rows.
    n_steps = max(2, _cdiv(B, block_b))
    if n_steps % 2:
        n_steps += 1
    return _round_up(_cdiv(B, n_steps), 128)


def _critic_kernel(x_ref, w1_ref, b1_ref, w2_ref, b2_ref, w3_ref, b3_ref, o_ref):
    # Layer 1: Linear(dim_s+dim_a -> 400) + ReLU. Single MXU matmul, f32 accumulation.
    h1 = (jnp.dot(x_ref[...], w1_ref[...], preferred_element_type=jnp.float32)
          + b1_ref[...])
    h1 = jnp.maximum(h1, 0.0)

    # Layer 2: Linear(400 -> 200) + ReLU on the MXU (f32 accumulation).
    h2 = (jnp.dot(h1.astype(w2_ref.dtype), w2_ref[...],
                  preferred_element_type=jnp.float32) + b2_ref[...])
    h2 = jnp.maximum(h2, 0.0)

    # Output layer (200 -> 1): an N=1 matmul would waste the MXU, so run it on the
    # VPU (elementwise multiply) + XLU (lane reduce). w3_ref is (1, 200), lane-major.
    q = jnp.sum(h2 * w3_ref[...], axis=-1)                       # (tb,)

    # Lane-dense store: output tile is (1, tb).
    o_ref[...] = (q[None, :] + b3_ref[...]).astype(o_ref.dtype)


def critic_forward(s, a, params, *, block_b=1024, compute_dtype=jnp.bfloat16):
    """Pallas implementation of CriticNetwork.forward(s, a). Returns (B, 1) float32."""
    w1, b1, w2, b2, w3, b3 = params
    B, dim_s = s.shape
    dim_a = a.shape[1]
    x_dim = dim_s + dim_a

    # Fused concat (done once in the wrapper; ~80 B/row of extra HBM traffic).
    x = jnp.concatenate([s, a], axis=1)

    # Batch tile + padding so every grid step sees a full (tb, x_dim) block.
    tb = _choose_tile(B, block_b)
    b_pad = _round_up(B, tb)
    if b_pad != B:
        x = jnp.pad(x, ((0, b_pad - B), (0, 0)))

    cdt = compute_dtype
    x = x.astype(cdt)
    w1_c = w1.astype(cdt)                    # (dim_s+dim_a, 400)
    w2_c = w2.astype(cdt)                    # (400, 200)
    w3_row = w3.reshape(1, -1).astype(cdt)   # (1, 200) lane-major for the VPU path
    b1_c = b1.astype(jnp.float32)
    b2_c = b2.astype(jnp.float32)
    b3_c = b3.astype(jnp.float32)

    grid = (b_pad // tb,)
    const = lambda i: (0, 0)   # weights/biases: one block, VMEM-resident across the grid

    # Scoped-VMEM limit: >= 32 MiB (lifts the v5e 16 MiB default for big tiles),
    # capped at 64 MiB so it is always valid on v7x's 64 MiB per-TC VMEM.
    vmem_limit = int(min(64 * 1024 * 1024,
                         max(32 * 1024 * 1024, tb * 8 * 1024)))

    # TODO(synk): weight/bias blocks are grid-invariant; pipeline_mode=pl.Buffered(1)
    # / SMEM biases would save a little VMEM but is skipped here for robustness.
    out = pl.pallas_call(
        _critic_kernel,
        out_shape=jax.ShapeDtypeStruct((1, b_pad), jnp.float32),
        grid=grid,
        in_specs=[
            pl.BlockSpec((tb, x_dim), lambda i: (i, 0)),   # batch tile of [s|a]
            pl.BlockSpec(w1_c.shape, const),
            pl.BlockSpec(b1_c.shape, const),
            pl.BlockSpec(w2_c.shape, const),
            pl.BlockSpec(b2_c.shape, const),
            pl.BlockSpec(w3_row.shape, const),
            pl.BlockSpec(b3_c.shape, const),
        ],
        out_specs=pl.BlockSpec((1, tb), lambda i: (0, i)),  # lane-dense output tile
        compiler_params=pltpu.CompilerParams(
            dimension_semantics=("parallel",),
            vmem_limit_bytes=vmem_limit),
    )(x, w1_c, b1_c, w2_c, b2_c, w3_row, b3_c)

    return out[0, :B].reshape(B, 1)


def init_critic_params(key, dim_s, dim_a):
    """PyTorch-style uniform(+-1/sqrt(fan_in)) init; weights stored [in, out]."""
    dims = [(dim_s + dim_a, 400), (400, 200), (200, 1)]
    keys = jax.random.split(key, 2 * len(dims))
    params = []
    for i, (fan_in, fan_out) in enumerate(dims):
        bound = 1.0 / jnp.sqrt(jnp.float32(fan_in))
        w = jax.random.uniform(keys[2 * i], (fan_in, fan_out),
                               minval=-bound, maxval=bound, dtype=jnp.float32)
        b = jax.random.uniform(keys[2 * i + 1], (1, fan_out),
                               minval=-bound, maxval=bound, dtype=jnp.float32)
        params += [w, b]
    return tuple(params)


def critic_reference(s, a, params, compute_dtype=jnp.float32):
    """Plain-JAX reference (highest-precision dots) for correctness checking."""
    w1, b1, w2, b2, w3, b3 = params
    cdt = compute_dtype
    hi = jax.lax.Precision.HIGHEST
    x = jnp.concatenate([s, a], axis=1).astype(cdt)
    h1 = jnp.maximum(jnp.dot(x, w1.astype(cdt), precision=hi,
                             preferred_element_type=jnp.float32) + b1, 0.0)
    h2 = jnp.maximum(jnp.dot(h1.astype(cdt), w2.astype(cdt), precision=hi,
                             preferred_element_type=jnp.float32) + b2, 0.0)
    return jnp.dot(h2.astype(cdt), w3.astype(cdt), precision=hi,
                   preferred_element_type=jnp.float32) + b3


if __name__ == "__main__":
    key = jax.random.PRNGKey(0)
    k_s, k_a, k_p, k_s2, k_a2 = jax.random.split(key, 5)

    dim_s, dim_a = 16, 4
    params = init_critic_params(k_p, dim_s, dim_a)

    # 1) Tiny batch (the module's toy usage): single padded tile, default bf16 compute.
    s = jax.random.normal(k_s, (2, dim_s), dtype=jnp.float32)
    a = jax.random.normal(k_a, (2, dim_a), dtype=jnp.float32)
    q = jax.block_until_ready(critic_forward(s, a, params))
    q_ref = critic_reference(s, a, params, compute_dtype=jnp.bfloat16)
    assert q.shape == (2, 1), q.shape
    assert jnp.allclose(q, q_ref, atol=5e-2, rtol=5e-2), (q, q_ref)

    # 1b) Same tiny batch in float32, checked against the f32 reference.
    q_f32 = jax.block_until_ready(
        critic_forward(s, a, params, compute_dtype=jnp.float32))
    q_f32_ref = critic_reference(s, a, params)
    assert jnp.allclose(q_f32, q_f32_ref, atol=1e-3, rtol=1e-3), (q_f32, q_f32_ref)

    # 2) Batch that exercises the grid + megacore split: B=300 -> 2 tiles of 256 rows
    #    (with zero-padding that is sliced off afterwards).
    s2 = jax.random.normal(k_s2, (300, dim_s), dtype=jnp.float32)
    a2 = jax.random.normal(k_a2, (300, dim_a), dtype=jnp.float32)
    q2 = jax.block_until_ready(
        critic_forward(s2, a2, params, compute_dtype=jnp.float32))
    q2_ref = critic_reference(s2, a2, params)
    assert q2.shape == (300, 1), q2.shape
    assert jnp.allclose(q2, q2_ref, atol=1e-3, rtol=1e-3), (q2, q2_ref)

    # 3) Default bf16 compute path on the gridded batch.
    q2_bf = jax.block_until_ready(critic_forward(s2, a2, params))
    q2_bf_ref = critic_reference(s2, a2, params, compute_dtype=jnp.bfloat16)
    assert jnp.allclose(q2_bf, q2_bf_ref, atol=5e-2, rtol=5e-2), (q2_bf, q2_bf_ref)

    print("KERNEL_OK")
</pallas_src>

<mosaic_0001>
module attributes {stable_mosaic.version = 11 : i64} {
  func.func @_critic_kernel(%arg0: i32, %arg1: memref<8x20xbf16, #tpu.memory_space<vmem>>, %arg2: memref<20x400xbf16, #tpu.memory_space<vmem>>, %arg3: memref<1x400xf32, #tpu.memory_space<vmem>>, %arg4: memref<400x200xbf16, #tpu.memory_space<vmem>>, %arg5: memref<1x200xf32, #tpu.memory_space<vmem>>, %arg6: memref<1x200xbf16, #tpu.memory_space<vmem>>, %arg7: memref<1x1xf32, #tpu.memory_space<vmem>>, %arg8: memref<1x8xf32, #tpu.memory_space<vmem>>) attributes {dimension_semantics = [#tpu.dimension_semantics<parallel>], iteration_bounds = array<i64: 1>, scalar_prefetch = 0 : i64, scratch_operands = 0 : i64, tpu.core_type = #tpu.core_type<tc>, window_params = [{transform_indices = @transform_0, window_bounds = array<i64: 8, 20>}, {pipeline_mode = #tpu.pipeline_mode<synchronous>, transform_indices = @transform_1, window_bounds = array<i64: 20, 400>}, {pipeline_mode = #tpu.pipeline_mode<synchronous>, transform_indices = @transform_2, window_bounds = array<i64: 1, 400>}, {pipeline_mode = #tpu.pipeline_mode<synchronous>, transform_indices = @transform_3, window_bounds = array<i64: 400, 200>}, {pipeline_mode = #tpu.pipeline_mode<synchronous>, transform_indices = @transform_4, window_bounds = array<i64: 1, 200>}, {pipeline_mode = #tpu.pipeline_mode<synchronous>, transform_indices = @transform_5, window_bounds = array<i64: 1, 200>}, {pipeline_mode = #tpu.pipeline_mode<synchronous>, transform_indices = @transform_6, window_bounds = array<i64: 1, 1>}, {transform_indices = @transform_7, window_bounds = array<i64: 1, 8>}]} {
    %c0 = arith.constant 0 : index
    %c0_0 = arith.constant 0 : index
    %0 = vector.load %arg1[%c0, %c0_0] : memref<8x20xbf16, #tpu.memory_space<vmem>>, vector<8x20xbf16>
    %c0_1 = arith.constant 0 : index
    %c0_2 = arith.constant 0 : index
    %1 = vector.load %arg2[%c0_1, %c0_2] : memref<20x400xbf16, #tpu.memory_space<vmem>>, vector<20x400xbf16>
    %cst = arith.constant dense<0.000000e+00> : vector<8x400xf32>
    %2 = tpu.matmul %0, %1, %cst {dimension_numbers = #tpu.dot_dimension_numbers<[1], [0], [0], [1], [0, 0, 1, 1], [], []>} : vector<8x20xbf16>, vector<20x400xbf16>, vector<8x400xf32> -> vector<8x400xf32>
    %c0_3 = arith.constant 0 : index
    %c0_4 = arith.constant 0 : index
    %3 = vector.load %arg3[%c0_3, %c0_4] : memref<1x400xf32, #tpu.memory_space<vmem>>, vector<1x400xf32>
    %4 = vector.broadcast %3 : vector<1x400xf32> to vector<8x400xf32>
    %5 = arith.addf %2, %4 : vector<8x400xf32>
    %cst_5 = arith.constant 0.000000e+00 : f32
    %6 = vector.broadcast %cst_5 : f32 to vector<8x400xf32>
    %7 = arith.maximumf %5, %6 : vector<8x400xf32>
    %8 = arith.truncf %7 : vector<8x400xf32> to vector<8x400xbf16>
    %c0_6 = arith.constant 0 : index
    %c0_7 = arith.constant 0 : index
    %9 = vector.load %arg4[%c0_6, %c0_7] : memref<400x200xbf16, #tpu.memory_space<vmem>>, vector<400x200xbf16>
    %cst_8 = arith.constant dense<0.000000e+00> : vector<8x200xf32>
    %10 = tpu.matmul %8, %9, %cst_8 {dimension_numbers = #tpu.dot_dimension_numbers<[1], [0], [0], [1], [0, 0, 1, 1], [], []>} : vector<8x400xbf16>, vector<400x200xbf16>, vector<8x200xf32> -> vector<8x200xf32>
    %c0_9 = arith.constant 0 : index
    %c0_10 = arith.constant 0 : index
    %11 = vector.load %arg5[%c0_9, %c0_10] : memref<1x200xf32, #tpu.memory_space<vmem>>, vector<1x200xf32>
    %12 = vector.broadcast %11 : vector<1x200xf32> to vector<8x200xf32>
    %13 = arith.addf %10, %12 : vector<8x200xf32>
    %cst_11 = arith.constant 0.000000e+00 : f32
    %14 = vector.broadcast %cst_11 : f32 to vector<8x200xf32>
    %15 = arith.maximumf %13, %14 : vector<8x200xf32>
    %c0_12 = arith.constant 0 : index
    %c0_13 = arith.constant 0 : index
    %16 = vector.load %arg6[%c0_12, %c0_13] : memref<1x200xbf16, #tpu.memory_space<vmem>>, vector<1x200xbf16>
    %17 = arith.extf %16 : vector<1x200xbf16> to vector<1x200xf32>
    %18 = vector.broadcast %17 : vector<1x200xf32> to vector<8x200xf32>
    %19 = arith.mulf %15, %18 : vector<8x200xf32>
    %cst_14 = arith.constant dense<0.000000e+00> : vector<8xf32>
    %20 = vector.multi_reduction <add>, %19, %cst_14 [1] : vector<8x200xf32> to vector<8xf32>
    %21 = vector.shape_cast %20 : vector<8xf32> to vector<1x8xf32>
    %c0_15 = arith.constant 0 : index
    %c0_16 = arith.constant 0 : index
    %22 = vector.load %arg7[%c0_15, %c0_16] : memref<1x1xf32, #tpu.memory_space<vmem>>, vector<1x1xf32>
    %23 = vector.broadcast %22 : vector<1x1xf32> to vector<1x8xf32>
    %24 = arith.addf %21, %23 : vector<1x8xf32>
    %c0_17 = arith.constant 0 : index
    %c0_18 = arith.constant 0 : index
    %25 = vector.load %arg8[%c0_17, %c0_18] : memref<1x8xf32, #tpu.memory_space<vmem>>, vector<1x8xf32>
    tpu.vector_store %arg8[%c0_17, %c0_18], %24 {strides = array<i32>} : memref<1x8xf32, #tpu.memory_space<vmem>>, vector<1x8xf32>,
    return
  }
  func.func @transform_0(%arg0: i32) -> (i32, i32) {
    %c0_i32 = arith.constant 0 : i32
    %c0_i32_0 = arith.constant 0 : i32
    return %arg0, %c0_i32 : i32, i32
  }
  func.func @transform_1(%arg0: i32) -> (i32, i32) {
    %c0_i32 = arith.constant 0 : i32
    %c0_i32_0 = arith.constant 0 : i32
    %c0_i32_1 = arith.constant 0 : i32
    return %c0_i32, %c0_i32_0 : i32, i32
  }
  func.func @transform_2(%arg0: i32) -> (i32, i32) {
    %c0_i32 = arith.constant 0 : i32
    %c0_i32_0 = arith.constant 0 : i32
    %c0_i32_1 = arith.constant 0 : i32
    return %c0_i32, %c0_i32_0 : i32, i32
  }
  func.func @transform_3(%arg0: i32) -> (i32, i32) {
    %c0_i32 = arith.constant 0 : i32
    %c0_i32_0 = arith.constant 0 : i32
    %c0_i32_1 = arith.constant 0 : i32
    return %c0_i32, %c0_i32_0 : i32, i32
  }
  func.func @transform_4(%arg0: i32) -> (i32, i32) {
    %c0_i32 = arith.constant 0 : i32
    %c0_i32_0 = arith.constant 0 : i32
    %c0_i32_1 = arith.constant 0 : i32
    return %c0_i32, %c0_i32_0 : i32, i32
  }
  func.func @transform_5(%arg0: i32) -> (i32, i32) {
    %c0_i32 = arith.constant 0 : i32
    %c0_i32_0 = arith.constant 0 : i32
    %c0_i32_1 = arith.constant 0 : i32
    return %c0_i32, %c0_i32_0 : i32, i32
  }
  func.func @transform_6(%arg0: i32) -> (i32, i32) {
    %c0_i32 = arith.constant 0 : i32
    %c0_i32_0 = arith.constant 0 : i32
    %c0_i32_1 = arith.constant 0 : i32
    return %c0_i32, %c0_i32_0 : i32, i32
  }
  func.func @transform_7(%arg0: i32) -> (i32, i32) {
    %c0_i32 = arith.constant 0 : i32
    %c0_i32_0 = arith.constant 0 : i32
    return %c0_i32, %arg0 : i32, i32
  }
}

</mosaic_0001>

<bundles_post_ra>
// kernel: tpu_custom_call.1
= control target key start
LH: loop header
LB: loop body
LE: loop exit
PB: predicated region body
PF: predicated region fallthrough
CT: control target
= control target key end

     0   :  { %s1088_s0 = inlined_call_operand.hbm [shape: bf16[8,20], index: 0, kind: input, shape index: {}]   ;;  %s1089_s1 = inlined_call_operand.hbm [shape: bf16[20,400], index: 1, kind: input, shape index: {}]   ;;  %s1090_s2 = inlined_call_operand.vmem [shape: f32[1,400], index: 2, kind: input, shape index: {}]   ;;  %s1091_s3 = inlined_call_operand.hbm [shape: bf16[400,200], index: 3, kind: input, shape index: {}]   ;;  %s1092_s4 = inlined_call_operand.vmem [shape: f32[1,200], index: 4, kind: input, shape index: {}]   ;;  %s1093_s5 = inlined_call_operand.vmem [shape: bf16[1,200], index: 5, kind: input, shape index: {}]   ;;  %s1094_s6 = inlined_call_operand.<no memory space> [shape: f32[1,1], index: 6, kind: input, shape index: {}]   ;;  %s1095_s7 = inlined_call_operand.hbm [shape: f32[1,8], index: 7, kind: output, shape index: {}]  }
   0x1   :  { %v12_v0 = vstv %s1094_s6 }
   0x2   :  { %13 = vst [vmem:[#allocation2] sm:$0x1] %v12_v0 }
   0x3   :  { %14 = vsyncpa [#allocation4], 0 }
   0x4   :  { %15 = vsyncpa [#allocation7], 0 }
   0x5   :  { %16 = vsyncpa [#allocation5], 0  ;;  %s956_s26 = smov [#allocation6]   ;;  %s862_s30 = scalar_lea.hbm %s1089_s1, 768 }
   0x6   :  { %s32_s27 = sshll.u32 %s956_s26, 4  ;;  %p863_p0 = scmp.ne.s32.totalorder %s1089_s1, %s862_s30  ;;  %s33_s27 = int_to_ptr.vmem [resolvable:$true] %s32_s27 }
   0x7   :  { %p866_p1 = scmp.lt.u32.totalorder %s862_s30, %s1089_s1 }
   0x9   :  { %p868_p2 = pnand %p866_p1, %p863_p0 }
   0xb   :  { %871 = shalt.err (!%p868_p2)
}
   0xc   :  { %s872_s6 = scalar_lea.vmem %s33_s27, 768  ;;  %p877_p4 = scmp.lt.s32.totalorder %s33_s27, %s33_s27 }
   0xd   :  { %p873_p3 = scmp.ne.s32.totalorder %s33_s27, %s872_s6  ;;  %p878_p5 = scmp.lt.s32.totalorder %s872_s6, %s872_s6 }
   0xf   :  { %p879_p6 = por %p878_p5, %p877_p4 }
  0x11   :  { %p880_p7 = pnand %p879_p6, %p873_p3 }
  0x13   :  { %883 = shalt.err (!%p880_p7)
}
  0x14   :  { %s957_s12 = smov 256   ;;  %s958_s13 = smov 16  }
  0x15   :  { %38 = dma.hbm_to_vmem [thread:$0]  %s1089_s1, 768, %s33_s27, [#allocation7], %s957_s12, %s957_s12, %s958_s13  }
  0x16   :  { %s959_s16 = smov [#allocation3]   ;;  %s960_s18 = smov [#allocation8]  }
  0x17   :  { %s23_s17 = sshll.u32 %s959_s16, 4  ;;  %s46_s19 = sshll.u32 %s960_s18, 4  ;;  %s24_s17 = int_to_ptr.vmem [resolvable:$true] %s23_s17  ;;  %s47_s19 = int_to_ptr.vmem [resolvable:$true] %s46_s19 }
  0x18   :  { %s884_s22 = scalar_lea.hbm %s1088_s0, 64 }
  0x19   :  { %p885_p8 = scmp.ne.s32.totalorder %s1088_s0, %s884_s22  ;;  %p888_p9 = scmp.lt.u32.totalorder %s884_s22, %s1088_s0 }
  0x1b   :  { %p890_p10 = pnand %p888_p9, %p885_p8 }
  0x1d   :  { %893 = shalt.err (!%p890_p10)
}
  0x1e   :  { %s894_s1 = scalar_lea.vmem %s24_s17, 64  ;;  %p899_p12 = scmp.lt.s32.totalorder %s24_s17, %s24_s17 }
  0x1f   :  { %p895_p11 = scmp.ne.s32.totalorder %s24_s17, %s894_s1  ;;  %p900_p13 = scmp.lt.s32.totalorder %s894_s1, %s894_s1 }
  0x21   :  { %p901_p0 = por %p900_p13, %p899_p12 }
  0x23   :  { %p902_p1 = pnand %p901_p0, %p895_p11 }
  0x25   :  { %905 = shalt.err (!%p902_p1)
}
  0x26   :  { %26 = dma.hbm_to_vmem [thread:$0]  %s1088_s0, 64, %s24_s17, [#allocation4]  }
  0x27   :  { %s906_s8 = scalar_lea.hbm %s1091_s3, 6400 }
  0x28   :  { %p907_p2 = scmp.ne.s32.totalorder %s1091_s3, %s906_s8  ;;  %p910_p3 = scmp.lt.u32.totalorder %s906_s8, %s1091_s3 }
  0x2a   :  { %p912_p4 = pnand %p910_p3, %p907_p2 }
  0x2c   :  { %915 = shalt.err (!%p912_p4)
}
  0x2d   :  { %s916_s12 = scalar_lea.vmem %s47_s19, 6400  ;;  %p921_p6 = scmp.lt.s32.totalorder %s47_s19, %s47_s19 }
  0x2e   :  { %p917_p5 = scmp.ne.s32.totalorder %s47_s19, %s916_s12  ;;  %p922_p7 = scmp.lt.s32.totalorder %s916_s12, %s916_s12 }
  0x30   :  { %p923_p8 = por %p922_p7, %p921_p6 }
  0x32   :  { %p924_p9 = pnand %p923_p8, %p917_p5 }
  0x34   :  { %927 = shalt.err (!%p924_p9)
}
  0x35   :  { %s961_s0 = smov 128   ;;  %s962_s13 = smov 8  }
  0x36   :  { %52 = dma.hbm_to_vmem [thread:$0]  %s1091_s3, 6400, %s47_s19, [#allocation7], %s961_s0, %s961_s0, %s962_s13  }
  0x37   :  { %950 = dma.done.wait [#allocation4], 64  }
  0x38   :  { %951 = vsyncadd [#allocation4], 4294967232 }
  0x39   :  { %952 = dma.done.wait [#allocation7], 7168  }
  0x3a   :  { %953 = vsyncadd [#allocation7], 4294960128  ;;  %v963_v1 = vmov 0   ;;  %v777_v2 = vld [vmem:[#allocation6 + $0x4] ss:$16 sps:$4 sm:$0xff]   ;;  %vm132_vm0 = vcmask 1041408  }
  0x3b   :  { %177 = vmatprep.mubr.bf16.mxu0 %v963_v1  ;;  %776 = vset.pattern.permute.xlu0 %v963_v1  ;;  %v779_v3 = vld [vmem:[#allocation6] ss:$16 sps:$4 sm:$0xff]   ;;  %v784_v7 = vld [vmem:[#allocation6 + $0xc] ss:$16 sps:$4 sm:$0xff]   ;;  %vm128_vm1 = vcmask 162816   ;;  %vm547_vm2 = vcmask 130048  }
  0x3c   :  { %v74_v4 = vld [vmem:[#allocation6 + $0x20] sm:$0x33]  ;;  %145 = vmatprep.subr.bf16.mxu0 %v777_v2  ;;  %v75_v8 = vld [vmem:[#allocation6 + $0x28] sm:$0x33]  ;;  %v787_v10 = vld [vmem:[#allocation8 + $0x4] ss:$8 sps:$4 sm:$0xff]  }
  0x3d   :  { %v705_v5 = vcombine.high %v74_v4, %v74_v4  ;;  %v704_v6 = vcombine.low %v74_v4, %v74_v4  ;;  %146 = vmatpush1.bf16.msra.mxu0 %v779_v3  ;;  %v789_v11 = vld [vmem:[#allocation8] ss:$8 sps:$4 sm:$0xff]   ;;  %v790_v12 = vld [vmem:[#allocation8 + $0x14] ss:$8 sps:$4 sm:$0xff]   ;;  %551 = vmatprep.subr.bf16.mxu1 %v787_v10  ;;  %v69_v13 = vld [vmem:[#allocation3] sm:$0xf]  ;;  %v707_v15 = vcombine.high %v75_v8, %v75_v8 }
  0x3e   :  { %v782_v14 = vld [vmem:[#allocation6 + $0x8] ss:$16 sps:$4 sm:$0xff]   ;;  %552 = vmatpush1.bf16.msra.mxu1 %v789_v11  ;;  %v706_v16 = vcombine.low %v75_v8, %v75_v8  ;;  %v793_v18 = vld [vmem:[#allocation8 + $0x24] ss:$8 sps:$4 sm:$0xff]   ;;  %v796_v21 = vld [vmem:[#allocation8 + $0x34] ss:$8 sps:$4 sm:$0xff]  }
  0x3f   :  { %708 = vmatprep.subr.msk.bf16.mxu0 %vm132_vm0, %v705_v5  ;;  %v134_v9 = vsel %vm132_vm0, %v704_v6, 0  ;;  %553 = vmatprep.subr.bf16.mxu1 %v790_v12  ;;  %v792_v17 = vld [vmem:[#allocation8 + $0x10] ss:$8 sps:$4 sm:$0xff]   ;;  %v795_v20 = vld [vmem:[#allocation8 + $0x20] ss:$8 sps:$4 sm:$0xff]   ;;  %vm658_vm3 = vcmask 588800  }
  0x40   :  { %v140_v19 = vsel %vm132_vm0, %v706_v16, 0  ;;  %v798_v22 = vld [vmem:[#allocation8 + $0x30] ss:$8 sps:$4 sm:$0xff]   ;;  %v799_v23 = vld [vmem:[#allocation8 + $0x44] ss:$8 sps:$4 sm:$0xff]   ;;  %vm682_vm4 = vcmask 57344  }
  0x41   :  { %148 = vmatpush1.bf16.msra.mxu0 %v134_v9  ;;  %v816_v24 = vld [vmem:[#allocation8 + $0x100] ss:$8 sps:$4 sm:$0xff]   ;;  %v818_v25 = vld [vmem:[#allocation8 + $0x104] ss:$8 sps:$4 sm:$0xff]   ;;  %v822_v27 = vld [vmem:[#allocation8 + $0x110] ss:$8 sps:$4 sm:$0xff]  }
  0x42   :  { %186 = vmatprep.subr.bf16.mxu0 %v784_v7  ;;  %554 = vmatpush1.bf16.msra.mxu1 %v792_v17  ;;  %v801_v26 = vld [vmem:[#allocation8 + $0x40] ss:$8 sps:$4 sm:$0xff]   ;;  %v824_v28 = vld [vmem:[#allocation8 + $0x114] ss:$8 sps:$4 sm:$0xff]   ;;  %v804_v30 = vld [vmem:[#allocation8 + $0x50] ss:$8 sps:$4 sm:$0xff]  }
  0x43   :  { %555 = vmatprep.subr.bf16.mxu1 %v793_v18  ;;  %v802_v29 = vld [vmem:[#allocation8 + $0x54] ss:$8 sps:$4 sm:$0xff]   ;;  %v830_v31 = vld [vmem:[#allocation8 + $0x124] ss:$8 sps:$4 sm:$0xff]   ;;  %v828_v32 = vld [vmem:[#allocation8 + $0x120] ss:$8 sps:$4 sm:$0xff]  }
  0x44   :  { %709 = vmatmul.mubr.msk.bf16.vlgmr.msra.gmra.mrb[0].mxu0 %vm128_vm1, %v69_v13  ;;  %v805_v33 = vld [vmem:[#allocation8 + $0x64] ss:$8 sps:$4 sm:$0xff]   ;;  %v836_v34 = vld [vmem:[#allocation8 + $0x134] ss:$8 sps:$4 sm:$0xff]   ;;  %v807_v35 = vld [vmem:[#allocation8 + $0x60] ss:$8 sps:$4 sm:$0xff]  }
  0x45   :  { %187 = vmatpush1.bf16.msra.mxu0 %v782_v14  ;;  %218 = vmatprep.mubr.bf16.mxu0 %v963_v1  ;;  %v808_v36 = vld [vmem:[#allocation8 + $0x74] ss:$8 sps:$4 sm:$0xff]   ;;  %v834_v37 = vld [vmem:[#allocation8 + $0x130] ss:$8 sps:$4 sm:$0xff]   ;;  %v842_v38 = vld [vmem:[#allocation8 + $0x144] ss:$8 sps:$4 sm:$0xff]   ;;  %v78_v1 = vlaneseq }
  0x46   :  { %710 = vmatprep.subr.msk.bf16.mxu0 %vm132_vm0, %v707_v15  ;;  %556 = vmatpush1.bf16.msra.mxu1 %v795_v20  ;;  %v810_v39 = vld [vmem:[#allocation8 + $0x70] ss:$8 sps:$4 sm:$0xff]   ;;  %v840_v40 = vld [vmem:[#allocation8 + $0x140] ss:$8 sps:$4 sm:$0xff]   ;;  %v811_v41 = vld [vmem:[#allocation8 + $0x84] ss:$8 sps:$4 sm:$0xff]  }
  0x47   :  { %557 = vmatprep.subr.bf16.mxu1 %v796_v21  ;;  %v813_v42 = vld [vmem:[#allocation8 + $0x80] ss:$8 sps:$4 sm:$0xff]   ;;  %v814_v43 = vld [vmem:[#allocation8 + $0x94] ss:$8 sps:$4 sm:$0xff]   ;;  %v819_v44 = vld [vmem:[#allocation8 + $0x90] ss:$8 sps:$4 sm:$0xff]  }
  0x48   :  { %v820_v45 = vld [vmem:[#allocation8 + $0xa4] ss:$8 sps:$4 sm:$0xff]   ;;  %v825_v46 = vld [vmem:[#allocation8 + $0xa0] ss:$8 sps:$4 sm:$0xff]   ;;  %v826_v47 = vld [vmem:[#allocation8 + $0xb4] ss:$8 sps:$4 sm:$0xff]  }
  0x49   :  { %189 = vmatpush1.bf16.msra.mxu0 %v140_v19  ;;  %v831_v48 = vld [vmem:[#allocation8 + $0xb0] ss:$8 sps:$4 sm:$0xff]   ;;  %v832_v49 = vld [vmem:[#allocation8 + $0xc4] ss:$8 sps:$4 sm:$0xff]   ;;  %v837_v50 = vld [vmem:[#allocation8 + $0xc0] ss:$8 sps:$4 sm:$0xff]  }
  0x4a   :  { %592 = vmatprep.subr.bf16.mxu0 %v818_v25  ;;  %558 = vmatpush1.bf16.msra.mxu1 %v798_v22  ;;  %v838_v51 = vld [vmem:[#allocation8 + $0xd4] ss:$8 sps:$4 sm:$0xff]   ;;  %v843_v52 = vld [vmem:[#allocation8 + $0xd0] ss:$8 sps:$4 sm:$0xff]   ;;  %v844_v53 = vld [vmem:[#allocation8 + $0xe4] ss:$8 sps:$4 sm:$0xff]  }
  0x4b   :  { %559 = vmatprep.subr.bf16.mxu1 %v799_v23  ;;  %v848_v54 = vld [vmem:[#allocation8 + $0x154] ss:$8 sps:$4 sm:$0xff]   ;;  %v846_v55 = vld [vmem:[#allocation8 + $0x150] ss:$8 sps:$4 sm:$0xff]   ;;  %v849_v56 = vld [vmem:[#allocation8 + $0xe0] ss:$8 sps:$4 sm:$0xff]  }
  0x4c   :  { %711 = vmatmul.mubr.msk.bf16.vlgmr.msra.gmra.mrb[4].mxu0 %vm128_vm1, %v69_v13  ;;  %v850_v57 = vld [vmem:[#allocation8 + $0xf4] ss:$8 sps:$4 sm:$0xff]   ;;  %v854_v58 = vld [vmem:[#allocation8 + $0x164] ss:$8 sps:$4 sm:$0xff]   ;;  %v852_v59 = vld [vmem:[#allocation8 + $0x160] ss:$8 sps:$4 sm:$0xff]  }
  0x4d   :  { %593 = vmatpush1.bf16.msra.mxu0 %v816_v24  ;;  %v855_v60 = vld [vmem:[#allocation8 + $0xf0] ss:$8 sps:$4 sm:$0xff]   ;;  %v858_v61 = vld [vmem:[#allocation8 + $0x174] ss:$8 sps:$4 sm:$0xff]   ;;  %v861_v63 = vld [vmem:[#allocation8 + $0x184] ss:$8 sps:$4 sm:$0xff]  }
  0x4e   :  { %594 = vmatprep.subr.bf16.mxu0 %v824_v28  ;;  %560 = vmatpush1.bf16.msra.mxu1 %v801_v26  ;;  %v856_v62 = vld [vmem:[#allocation8 + $0x170] ss:$8 sps:$4 sm:$0xff]   ;;  %v859_v0 = vld [vmem:[#allocation8 + $0x180] ss:$8 sps:$4 sm:$0xff]   ;;  %v1051_v2 = vshrl.u32 %v78_v1, 7 }
  0x4f   :  { %561 = vmatprep.subr.bf16.mxu1 %v802_v29  ;;  %v76_v4 = vld [vmem:[%s1090_s2] sm:$0xf] }
  0x50   :  { %v1054_v3 = vsub.s32 0, %v1051_v2  ;;  %v84_v5 = vsub.s32 1, %v1051_v2  ;;  %v88_v11 = vsub.s32 2, %v1051_v2  ;;  %v92_v14 = vsub.s32 3, %v1051_v2 }
  0x51   :  { %595 = vmatpush1.bf16.msra.mxu0 %v822_v27 }
  0x52   :  { %596 = vmatprep.subr.bf16.mxu0 %v830_v31  ;;  %562 = vmatpush1.bf16.msra.mxu1 %v804_v30  ;;  %v81_v6 = vrot.slane %v76_v4, %v1054_v3  ;;  %v85_v7 = vrot.slane %v76_v4, %v84_v5  ;;  %v89_v18 = vrot.slane %v76_v4, %v88_v11 }
  0x53   :  { %563 = vmatprep.subr.bf16.mxu1 %v805_v33  ;;  %v93_v20 = vrot.slane %v76_v4, %v92_v14  ;;  %v285_v33 = vld [vmem:[%s1092_s4] sm:$0x3]  ;;  %s964_s4 = smov [#allocation9]  }
  0x55   :  { %597 = vmatpush1.bf16.msra.mxu0 %v828_v32  ;;  %v635_v32 = vld [vmem:[%s1093_s5] sm:$0x3]  ;;  %s690_s5 = sshll.u32 %s964_s4, 4  ;;  %s691_s5 = int_to_ptr.vmem [resolvable:$true] %s690_s5 }
  0x56   :  { %598 = vmatprep.subr.bf16.mxu0 %v836_v34  ;;  %564 = vmatpush1.bf16.msra.mxu1 %v807_v35  ;;  %s928_s20 = scalar_lea.vmem %s691_s5, 16  ;;  %s932_s21 = scalar_lea.vmem %s691_s5, 32 }
  0x57   :  { %565 = vmatprep.subr.bf16.mxu1 %v808_v36  ;;  %v636_v36 = vunpack.c.l.bf16 %v635_v32  ;;  %p929_p10 = scmp.ne.s32.totalorder %s691_s5, %s928_s20  ;;  %p933_p11 = scmp.lt.s32.totalorder %s691_s5, %s691_s5 }
  0x58   :  { %p934_p12 = scmp.lt.s32.totalorder %s932_s21, %s928_s20 }
  0x59   :  { %599 = vmatpush1.bf16.msra.mxu0 %v834_v37 }
  0x5a   :  { %600 = vmatprep.subr.bf16.mxu0 %v842_v38  ;;  %566 = vmatpush1.bf16.msra.mxu1 %v810_v39  ;;  %v290_v38 = vrot.slane %v285_v33, %v1054_v3  ;;  %p935_p13 = por %p934_p12, %p933_p11 }
  0x5b   :  { %567 = vmatprep.subr.bf16.mxu1 %v811_v41  ;;  %v645_v41 = vrot.slane %v636_v36, %v88_v11 }
  0x5c   :  { %p936_p0 = pnand %p935_p13, %p929_p10 }
  0x5d   :  { %601 = vmatpush1.bf16.msra.mxu0 %v840_v40  ;;  %v294_v40 = vrot.slane %v285_v33, %v84_v5 }
  0x5e   :  { %568 = vmatpush1.bf16.msra.mxu1 %v813_v42  ;;  %602 = vmatprep.subr.bf16.mxu0 %v848_v54 }
  0x5f   :  { %569 = vmatprep.subr.bf16.mxu1 %v814_v43  ;;  %v641_v43 = vrot.slane %v636_v36, %v1054_v3 }
  0x61   :  { %603 = vmatpush1.bf16.msra.mxu0 %v846_v55 }
  0x62   :  { %570 = vmatpush1.bf16.msra.mxu1 %v819_v44  ;;  %604 = vmatprep.subr.bf16.mxu0 %v854_v58 }
  0x63   :  { %571 = vmatprep.subr.bf16.mxu1 %v820_v45 }
  0x65   :  { %605 = vmatpush1.bf16.msra.mxu0 %v852_v59  ;;  %v663_v59 = vld [vmem:[#allocation2] sm:$0x1] }
  0x66   :  { %572 = vmatpush1.bf16.msra.mxu1 %v825_v46  ;;  %606 = vmatprep.subr.bf16.mxu0 %v858_v61  ;;  %v676_v61 = vand.u32 127, %v78_v1 }
  0x67   :  { %573 = vmatprep.subr.bf16.mxu1 %v826_v47 }
  0x69   :  { %607 = vmatpush1.bf16.msra.mxu0 %v856_v62 }
  0x6a   :  { %574 = vmatpush1.bf16.msra.mxu1 %v831_v48  ;;  %608 = vmatprep.subr.bf16.mxu0 %v861_v63  ;;  %v679_v63 = vsub.s32 %v676_v61, %v1051_v2 }
  0x6b   :  { %575 = vmatprep.subr.bf16.mxu1 %v832_v49 }
  0x6d   :  { %609 = vmatpush1.bf16.msra.mxu0 %v859_v0 }
  0x6e   :  { %576 = vmatpush1.bf16.msra.mxu1 %v837_v50  ;;  %v655_v50 = vrot.slane %v645_v41, %v1054_v3 }
  0x6f   :  { %577 = vmatprep.subr.bf16.mxu1 %v838_v51 }
  0x72   :  { %578 = vmatpush1.bf16.msra.mxu1 %v843_v52 }
  0x73   :  { %579 = vmatprep.subr.bf16.mxu1 %v844_v53  ;;  %v651_v53 = vrot.slane %v641_v43, %v1054_v3 }
  0x76   :  { %580 = vmatpush1.bf16.msra.mxu1 %v849_v56 }
  0x77   :  { %581 = vmatprep.subr.bf16.mxu1 %v850_v57 }
  0x7a   :  { %582 = vmatpush1.bf16.msra.mxu1 %v855_v60 }
 0x117   :  { %v179_v8 = vpop.f32.mrb[0].mxu0 }
 0x118   :  { %v180_v9 = vadd.f32 %v179_v8, %v81_v6  ;;  %v181_v10 = vpop.f32.mrb[1].mxu0 }
 0x119   :  { %v182_v12 = vadd.f32 %v181_v10, %v85_v7  ;;  %v183_v13 = vpop.f32.mrb[2].mxu0 }
 0x11a   :  { %v227_v15 = vmax.f32 %v180_v9, 0.0  ;;  %v184_v16 = vpop.f32.mrb[3].mxu0 }
 0x11b   :  { %v228_v17 = vmax.f32 %v182_v12, 0.0 }
 0x11c   :  { %v231_v21 = vpack.c.bf16 %v227_v15, %v227_v15 }
 0x11d   :  { %v232_v19 = vpack.c.bf16 %v228_v17, %v228_v17 }
 0x11f   :  { %v220_v22 = vpop.f32.mrb[4].mxu0  ;;  %583 = vmatprep.mubr.bf16.mxu1 %v232_v19 }
 0x120   :  { %v221_v23 = vadd.f32 %v220_v22, %v89_v18  ;;  %v222_v24 = vpop.f32.mrb[5].mxu0  ;;  %584 = vmatmul.mubr.bf16.vlgmr.msra.gmra.mrb[0].mxu1 %v231_v21 }
 0x121   :  { %v223_v25 = vadd.f32 %v222_v24, %v93_v20  ;;  %v224_v26 = vpop.f32.mrb[6].mxu0 }
 0x122   :  { %v229_v27 = vmax.f32 %v221_v23, 0.0  ;;  %v225_v28 = vpop.f32.mrb[7].mxu0 }
 0x123   :  { %v230_v29 = vmax.f32 %v223_v25, 0.0 }
 0x124   :  { %v233_v31 = vpack.c.bf16 %v229_v27, %v229_v27 }
 0x125   :  { %v234_v30 = vpack.c.bf16 %v230_v29, %v230_v29 }
 0x127   :  { %762 = vmatprep.mubr.msk.bf16.mxu0 %vm547_vm2, %v234_v30 }
 0x128   :  { %625 = vmatmul.mubr.bf16.vlgmr.msra.gmra.mrb[8].mxu0 %v233_v31 }
 0x1f3   :  { %v585_v34 = vpop.f32.mrb[0].mxu1 }
 0x1f4   :  { %v587_v35 = vpop.f32.mrb[1].mxu1  ;;  %v586_v42 = vadd.f32 %v585_v34, %v290_v38 }
 0x1f5   :  { %v589_v37 = vpop.f32.mrb[2].mxu1  ;;  %v588_v44 = vadd.f32 %v587_v35, %v294_v40 }
 0x1f6   :  { %v590_v39 = vpop.f32.mrb[3].mxu1 }
 0x1fb   :  { %v626_v45 = vpop.f32.mrb[8].mxu0 }
 0x1fc   :  { %v627_v46 = vadd.f32 %v626_v45, %v586_v42  ;;  %v628_v47 = vpop.f32.mrb[9].mxu0 }
 0x1fd   :  { %v629_v48 = vadd.f32 %v628_v47, %v588_v44  ;;  %v630_v49 = vpop.f32.mrb[10].mxu0 }
 0x1fe   :  { %v633_v51 = vmax.f32 %v627_v46, 0.0  ;;  %v631_v52 = vpop.f32.mrb[11].mxu0 }
 0x1ff   :  { %v634_v54 = vmax.f32 %v629_v48, 0.0 }
 0x200   :  { %v656_v56 = vmul.f32 %v651_v53, %v633_v51 }
 0x201   :  { %v657_v55 = vmul.f32 %v655_v50, %v634_v54 }
 0x203   :  { %v659_v57 = vsel %vm658_vm3, %v657_v55, 0.0 }
 0x204   :  { %v660_v58 = vadd.f32 %v659_v57, %v656_v56 }
 0x206   :  { %661 = vadd.xlane.f32.xlu0 %v660_v58 }
 0x21c   :  { %666 = vperm.xlu0 %776, %v663_v59  }
 0x293   :  { %v662_v60 = vpop.xlane.xlu0 %661 }
 0x29b   :  { %v667_v62 = vpop.permute.xlu0 %666 }
 0x29c   :  { %v672_v0 = vrot.slane %v667_v62, %v1054_v3 }
 0x29e   :  { %v673_v4 = vadd.f32 %v672_v0, %v662_v60 }
 0x2a0   :  { %v680_v5 = vrot.slane %v673_v4, %v679_v63 }
 0x2a2   :  { %683 = vst.msk [vmem:[#allocation9] sm:$0x1] %vm682_vm4, %v680_v5 }
 0x2a3   :  { %939 = shalt.err (!%p936_p0)
}
 0x2a4   :  { %s940_s24 = scalar_lea.hbm %s1095_s7, 16 }
 0x2a5   :  { %p941_p1 = scmp.ne.s32.totalorder %s1095_s7, %s940_s24  ;;  %p944_p2 = scmp.lt.u32.totalorder %s940_s24, %s1095_s7 }
 0x2a7   :  { %p946_p3 = pnand %p944_p2, %p941_p1 }
 0x2a9   :  { %949 = shalt.err (!%p946_p3)
}
 0x2aa   :  { %693 = dma.vmem_to_hbm [thread:$0]  %s691_s5, 16, %s1095_s7, [#allocation5]  }
 0x2ab   :  { %954 = dma.done.wait [#allocation5], 16  }
 0x2ac   :  { %955 = vsyncadd [#allocation5], 4294967280 }
 0x2ad   :  { %697 = vsyncpa [#allocation4], 1 }
 0x2ae   :  { %698 = vsyncpa [#allocation7], 1 }
 0x2af   :  { %699 = vsyncpa [#allocation5], 1 }

</bundles_post_ra>
